<compile_context>
chip_gen: v5e
topology: v5e:2x2
jax: 0.10.0
libtpu: 0.0.40
codegen_flags: <defaults>
</compile_context>

<pallas_src>
import functools

import jax
import jax.numpy as jnp
from jax.experimental import pallas as pl
from jax.experimental.pallas import tpu as pltpu


def conv_block_kernel(x_ref, w1_ref, b1_ref, w2_ref, b2_ref, wu_ref, bu_ref,
                      out_ref, m_ref, *, L, mm_dtype):
    NBL, C = x_ref.shape            # rows = block_n * L, lanes = channels
    nb = NBL // L                   # samples folded into this block

    # Sample-boundary masks (rows are [sample0 | sample1 | ...], each L long).
    row = jax.lax.broadcasted_iota(jnp.int32, (NBL, C), 0)
    is_first = row == 0
    is_last = row == (L - 1)
    for b in range(1, nb):          # nb is a trace-time Python int
        is_first = jnp.logical_or(is_first, row == b * L)
        is_last = jnp.logical_or(is_last, row == (b * L + L - 1))

    def shift_prev(v, fill):        # r[i] = v[i-1]; sample boundaries -> fill
        r = jnp.concatenate([v[0:1, :], v[:-1, :]], axis=0)
        return jnp.where(is_first, fill, r)

    def shift_next(v, fill):        # r[i] = v[i+1]; sample boundaries -> fill
        r = jnp.concatenate([v[1:, :], v[-1:, :]], axis=0)
        return jnp.where(is_last, fill, r)

    def conv3_bn(v, w_ref_, b_ref_):
        # k=3, stride=1, pad=1 conv + folded BN as a single MXU matmul.
        # Taps stacked along lanes as [x[i-1] | x[i] | x[i+1]] -> contraction 3C.
        xs = jnp.concatenate([shift_prev(v, 0.0), v, shift_next(v, 0.0)], axis=1)
        return jnp.dot(xs.astype(mm_dtype), w_ref_[...],
                       preferred_element_type=jnp.float32) + b_ref_[...]

    x = x_ref[...].astype(jnp.float32)

    h = jnp.maximum(conv3_bn(x, w1_ref, b1_ref), 0.0)   # conv1 + bn1 + relu
    h = jnp.maximum(conv3_bn(h, w2_ref, b2_ref), 0.0)   # conv2 + bn2 + relu

    # MaxPool1d(kernel=3, stride=2, padding=1):
    #   m[i] = max(h[i-1], h[i], h[i+1])   (boundaries padded with -inf),
    #   pooled = even rows of m  (sublane-strided select, no matmul).
    neg = -jnp.inf
    m_ref[...] = jnp.maximum(jnp.maximum(h, shift_prev(h, neg)),
                             shift_next(h, neg))
    pooled = m_ref[pl.ds(0, NBL // 2, stride=2), :]      # (block_n*Lp, C)

    # up_conv: 1x1 conv C -> 2C with folded bn3. Lane-dense (rows, 2C) store.
    y = jnp.dot(pooled.astype(mm_dtype), wu_ref[...],
                preferred_element_type=jnp.float32) + bu_ref[...]
    out_ref[...] = y.astype(out_ref.dtype)


def conv_block_forward(x, kernel_params, *, block_n=1, matmul_dtype=jnp.bfloat16):
    N, C, L = x.shape
    assert L % 2 == 0, "odd-L MaxPool1d(3,2,1) not handled (see TODO)"
    assert N % block_n == 0
    Lp = L // 2
    w1f, b1f, w2f, b2f, wuf, buf_ = kernel_params

    # MXU operands in matmul_dtype (bf16 halves weight DMA on v6e/v7x);
    # folded BN bias/shift stays f32 (added after f32 accumulation).
    w1f = w1f.astype(matmul_dtype)
    w2f = w2f.astype(matmul_dtype)
    wuf = wuf.astype(matmul_dtype)

    # Layout plumbing outside the kernel: (N, C, L) -> (N*L, C)
    # (channels on lanes, batch*seq on sublanes).
    x2 = jnp.transpose(x, (0, 2, 1)).reshape(N * L, C)

    nbl, nblp = block_n * L, block_n * Lp
    grid = (N // block_n,)

    kernel = functools.partial(conv_block_kernel, L=L, mm_dtype=matmul_dtype)

    out2 = pl.pallas_call(
        kernel,
        out_shape=jax.ShapeDtypeStruct((N * Lp, 2 * C), x.dtype),
        grid=grid,
        in_specs=[
            pl.BlockSpec((nbl, C), lambda n: (n, 0)),       # activations
            pl.BlockSpec((3 * C, C), lambda n: (0, 0)),     # conv1 (grid-invariant)
            pl.BlockSpec((1, C), lambda n: (0, 0)),
            pl.BlockSpec((3 * C, C), lambda n: (0, 0)),     # conv2 (grid-invariant)
            pl.BlockSpec((1, C), lambda n: (0, 0)),
            pl.BlockSpec((C, 2 * C), lambda n: (0, 0)),     # up_conv (grid-invariant)
            pl.BlockSpec((1, 2 * C), lambda n: (0, 0)),
        ],
        out_specs=pl.BlockSpec((nblp, 2 * C), lambda n: (n, 0)),
        scratch_shapes=[pltpu.VMEM((nbl, C), jnp.float32)],
        compiler_params=pltpu.CompilerParams(
            dimension_semantics=("parallel",)),
    )(x2, w1f, b1f, w2f, b2f, wuf, buf_)

    # (N*Lp, 2C) -> (N, 2C, Lp)
    return jnp.transpose(out2.reshape(N, Lp, 2 * C), (0, 2, 1))


def make_params(key, C):
    ks = jax.random.split(key, 18)
    eps = 1e-5

    def bn(kg, kb, km, kv, n):
        gamma = 1.0 + 0.1 * jax.random.normal(kg, (n,), jnp.float32)
        beta = 0.1 * jax.random.normal(kb, (n,), jnp.float32)
        mean = 0.1 * jax.random.normal(km, (n,), jnp.float32)
        var = 0.5 + jnp.abs(jax.random.normal(kv, (n,), jnp.float32))
        return gamma, beta, mean, var

    w1 = 0.1 * jax.random.normal(ks[0], (C, C, 3), jnp.float32)
    b1 = 0.1 * jax.random.normal(ks[1], (C,), jnp.float32)
    bn1 = bn(ks[2], ks[3], ks[4], ks[5], C)
    w2 = 0.1 * jax.random.normal(ks[6], (C, C, 3), jnp.float32)
    b2 = 0.1 * jax.random.normal(ks[7], (C,), jnp.float32)
    bn2 = bn(ks[8], ks[9], ks[10], ks[11], C)
    wu = 0.1 * jax.random.normal(ks[12], (2 * C, C, 1), jnp.float32)
    bu = 0.1 * jax.random.normal(ks[13], (2 * C,), jnp.float32)
    bn3 = bn(ks[14], ks[15], ks[16], ks[17], 2 * C)

    def fold(p):
        gamma, beta, mean, var = p
        scale = gamma / jnp.sqrt(var + eps)
        shift = beta - mean * scale
        return scale, shift

    s1, t1 = fold(bn1)
    s2, t2 = fold(bn2)
    s3, t3 = fold(bn3)

    # Fold eval-mode BN into the conv weights/bias and lay out for the kernel's
    # (rows, lanes) = (seq, channels) matmuls:
    #   Wf[k*C + cin, cout] = W[cout, cin, k] * scale[cout];  b' = scale*b + shift
    def fold_conv3(w, b, s, t):
        wf = (jnp.transpose(w, (2, 1, 0)) * s[None, None, :]).reshape(3 * C, C)
        bf = (s * b + t).reshape(1, C)
        return wf, bf

    w1f, b1f = fold_conv3(w1, b1, s1, t1)
    w2f, b2f = fold_conv3(w2, b2, s2, t2)
    wuf = (wu[:, :, 0] * s3[:, None]).T            # (C, 2C)
    buf_ = (s3 * bu + t3).reshape(1, 2 * C)

    kernel_params = (w1f, b1f, w2f, b2f, wuf, buf_)
    raw_params = (w1, b1, bn1, w2, b2, bn2, wu, bu, bn3)
    return kernel_params, raw_params


def reference_forward(x, raw_params):
    # Pure-JAX reference matching PyTorch eval-mode ConvBlock semantics.
    (w1, b1, bn1, w2, b2, bn2, wu, bu, bn3) = raw_params
    eps = 1e-5
    dn = ('NCH', 'OIH', 'NCH')

    def conv(x_, w, b, pad):
        y = jax.lax.conv_general_dilated(x_, w, window_strides=(1,),
                                         padding=((pad, pad),),
                                         dimension_numbers=dn)
        return y + b[None, :, None]

    def bn(x_, p):
        gamma, beta, mean, var = p
        return (x_ - mean[None, :, None]) / jnp.sqrt(var[None, :, None] + eps) \
            * gamma[None, :, None] + beta[None, :, None]

    h = conv(x, w1, b1, 1)
    h = bn(h, bn1)
    h = jax.nn.relu(h)
    h = conv(h, w2, b2, 1)
    h = bn(h, bn2)
    h = jax.nn.relu(h)
    h = jax.lax.reduce_window(h, -jnp.inf, jax.lax.max,
                              window_dimensions=(1, 1, 3),
                              window_strides=(1, 1, 2),
                              padding=((0, 0), (0, 0), (1, 1)))
    h = conv(h, wu, bu, 0)
    h = bn(h, bn3)
    return h


if __name__ == "__main__":
    N, C, L = 2, 8, 32
    key = jax.random.PRNGKey(0)
    kx, kp = jax.random.split(key)
    x = jax.random.normal(kx, (N, C, L), jnp.float32)

    kernel_params, raw_params = make_params(kp, C)
    ref = reference_forward(x, raw_params)

    # f32 MXU operands: tight correctness check.
    out32 = jax.block_until_ready(
        conv_block_forward(x, kernel_params, block_n=1, matmul_dtype=jnp.float32))
    assert out32.shape == (N, 2 * C, L // 2), out32.shape
    assert jnp.allclose(out32, ref, rtol=1e-3, atol=1e-3), \
        float(jnp.max(jnp.abs(out32 - ref)))

    # bf16 MXU operands (v6e/v7x recommendation), f32 accumulation: loose check.
    out16 = jax.block_until_ready(
        conv_block_forward(x, kernel_params, block_n=1, matmul_dtype=jnp.bfloat16))
    assert jnp.allclose(out16, ref, rtol=5e-2, atol=1e-1), \
        float(jnp.max(jnp.abs(out16 - ref)))

    print("KERNEL_OK")
</pallas_src>

<mosaic_0001>
module attributes {stable_mosaic.version = 11 : i64} {
  func.func @conv_block_kernel(%arg0: i32, %arg1: memref<32x8xf32, #tpu.memory_space<vmem>>, %arg2: memref<24x8xf32, #tpu.memory_space<vmem>>, %arg3: memref<1x8xf32, #tpu.memory_space<vmem>>, %arg4: memref<24x8xf32, #tpu.memory_space<vmem>>, %arg5: memref<1x8xf32, #tpu.memory_space<vmem>>, %arg6: memref<8x16xf32, #tpu.memory_space<vmem>>, %arg7: memref<1x16xf32, #tpu.memory_space<vmem>>, %arg8: memref<16x16xf32, #tpu.memory_space<vmem>>, %arg9: memref<32x8xf32, #tpu.memory_space<vmem>>) attributes {dimension_semantics = [#tpu.dimension_semantics<parallel>], iteration_bounds = array<i64: 2>, scalar_prefetch = 0 : i64, scratch_operands = 1 : i64, tpu.core_type = #tpu.core_type<tc>, window_params = [{transform_indices = @transform_0, window_bounds = array<i64: 32, 8>}, {pipeline_mode = #tpu.pipeline_mode<synchronous>, transform_indices = @transform_1, window_bounds = array<i64: 24, 8>}, {pipeline_mode = #tpu.pipeline_mode<synchronous>, transform_indices = @transform_2, window_bounds = array<i64: 1, 8>}, {pipeline_mode = #tpu.pipeline_mode<synchronous>, transform_indices = @transform_3, window_bounds = array<i64: 24, 8>}, {pipeline_mode = #tpu.pipeline_mode<synchronous>, transform_indices = @transform_4, window_bounds = array<i64: 1, 8>}, {pipeline_mode = #tpu.pipeline_mode<synchronous>, transform_indices = @transform_5, window_bounds = array<i64: 8, 16>}, {pipeline_mode = #tpu.pipeline_mode<synchronous>, transform_indices = @transform_6, window_bounds = array<i64: 1, 16>}, {transform_indices = @transform_7, window_bounds = array<i64: 16, 16>}]} {
    %0 = tpu.iota {dimensions = array<i32: 0>} : vector<32x8xi32>
    %c0_i32 = arith.constant 0 : i32
    %1 = vector.broadcast %c0_i32 : i32 to vector<32x8xi32>
    %2 = arith.cmpi eq, %0, %1 : vector<32x8xi32>
    %c31_i32 = arith.constant 31 : i32
    %3 = vector.broadcast %c31_i32 : i32 to vector<32x8xi32>
    %4 = arith.cmpi eq, %0, %3 : vector<32x8xi32>
    %c0 = arith.constant 0 : index
    %c0_0 = arith.constant 0 : index
    %5 = vector.load %arg1[%c0, %c0_0] : memref<32x8xf32, #tpu.memory_space<vmem>>, vector<32x8xf32>
    %6 = vector.extract_strided_slice %5 {offsets = [0, 0], sizes = [1, 8], strides = [1, 1]} : vector<32x8xf32> to vector<1x8xf32>
    %7 = vector.extract_strided_slice %5 {offsets = [0, 0], sizes = [31, 8], strides = [1, 1]} : vector<32x8xf32> to vector<31x8xf32>
    %8 = tpu.concatenate %6, %7 in 0 : vector<1x8xf32>, vector<31x8xf32> -> vector<32x8xf32>
    %cst = arith.constant 0.000000e+00 : f32
    %9 = vector.broadcast %cst : f32 to vector<32x8xf32>
    %10 = arith.select %2, %9, %8 : vector<32x8xi1>, vector<32x8xf32>
    %11 = vector.extract_strided_slice %5 {offsets = [1, 0], sizes = [31, 8], strides = [1, 1]} : vector<32x8xf32> to vector<31x8xf32>
    %12 = vector.extract_strided_slice %5 {offsets = [31, 0], sizes = [1, 8], strides = [1, 1]} : vector<32x8xf32> to vector<1x8xf32>
    %13 = tpu.concatenate %11, %12 in 0 : vector<31x8xf32>, vector<1x8xf32> -> vector<32x8xf32>
    %cst_1 = arith.constant 0.000000e+00 : f32
    %14 = vector.broadcast %cst_1 : f32 to vector<32x8xf32>
    %15 = arith.select %4, %14, %13 : vector<32x8xi1>, vector<32x8xf32>
    %16 = tpu.concatenate %10, %5, %15 in 1 : vector<32x8xf32>, vector<32x8xf32>, vector<32x8xf32> -> vector<32x24xf32>
    %c0_2 = arith.constant 0 : index
    %c0_3 = arith.constant 0 : index
    %17 = vector.load %arg2[%c0_2, %c0_3] : memref<24x8xf32, #tpu.memory_space<vmem>>, vector<24x8xf32>
    %cst_4 = arith.constant dense<0.000000e+00> : vector<32x8xf32>
    %18 = tpu.matmul %16, %17, %cst_4 {dimension_numbers = #tpu.dot_dimension_numbers<[1], [0], [0], [1], [0, 0, 1, 1], [], []>} : vector<32x24xf32>, vector<24x8xf32>, vector<32x8xf32> -> vector<32x8xf32>
    %c0_5 = arith.constant 0 : index
    %c0_6 = arith.constant 0 : index
    %19 = vector.load %arg3[%c0_5, %c0_6] : memref<1x8xf32, #tpu.memory_space<vmem>>, vector<1x8xf32>
    %20 = vector.broadcast %19 : vector<1x8xf32> to vector<32x8xf32>
    %21 = arith.addf %18, %20 : vector<32x8xf32>
    %cst_7 = arith.constant 0.000000e+00 : f32
    %22 = vector.broadcast %cst_7 : f32 to vector<32x8xf32>
    %23 = arith.maximumf %21, %22 : vector<32x8xf32>
    %24 = vector.extract_strided_slice %23 {offsets = [0, 0], sizes = [1, 8], strides = [1, 1]} : vector<32x8xf32> to vector<1x8xf32>
    %25 = vector.extract_strided_slice %23 {offsets = [0, 0], sizes = [31, 8], strides = [1, 1]} : vector<32x8xf32> to vector<31x8xf32>
    %26 = tpu.concatenate %24, %25 in 0 : vector<1x8xf32>, vector<31x8xf32> -> vector<32x8xf32>
    %cst_8 = arith.constant 0.000000e+00 : f32
    %27 = vector.broadcast %cst_8 : f32 to vector<32x8xf32>
    %28 = arith.select %2, %27, %26 : vector<32x8xi1>, vector<32x8xf32>
    %29 = vector.extract_strided_slice %23 {offsets = [1, 0], sizes = [31, 8], strides = [1, 1]} : vector<32x8xf32> to vector<31x8xf32>
    %30 = vector.extract_strided_slice %23 {offsets = [31, 0], sizes = [1, 8], strides = [1, 1]} : vector<32x8xf32> to vector<1x8xf32>
    %31 = tpu.concatenate %29, %30 in 0 : vector<31x8xf32>, vector<1x8xf32> -> vector<32x8xf32>
    %cst_9 = arith.constant 0.000000e+00 : f32
    %32 = vector.broadcast %cst_9 : f32 to vector<32x8xf32>
    %33 = arith.select %4, %32, %31 : vector<32x8xi1>, vector<32x8xf32>
    %34 = tpu.concatenate %28, %23, %33 in 1 : vector<32x8xf32>, vector<32x8xf32>, vector<32x8xf32> -> vector<32x24xf32>
    %c0_10 = arith.constant 0 : index
    %c0_11 = arith.constant 0 : index
    %35 = vector.load %arg4[%c0_10, %c0_11] : memref<24x8xf32, #tpu.memory_space<vmem>>, vector<24x8xf32>
    %cst_12 = arith.constant dense<0.000000e+00> : vector<32x8xf32>
    %36 = tpu.matmul %34, %35, %cst_12 {dimension_numbers = #tpu.dot_dimension_numbers<[1], [0], [0], [1], [0, 0, 1, 1], [], []>} : vector<32x24xf32>, vector<24x8xf32>, vector<32x8xf32> -> vector<32x8xf32>
    %c0_13 = arith.constant 0 : index
    %c0_14 = arith.constant 0 : index
    %37 = vector.load %arg5[%c0_13, %c0_14] : memref<1x8xf32, #tpu.memory_space<vmem>>, vector<1x8xf32>
    %38 = vector.broadcast %37 : vector<1x8xf32> to vector<32x8xf32>
    %39 = arith.addf %36, %38 : vector<32x8xf32>
    %cst_15 = arith.constant 0.000000e+00 : f32
    %40 = vector.broadcast %cst_15 : f32 to vector<32x8xf32>
    %41 = arith.maximumf %39, %40 : vector<32x8xf32>
    %42 = vector.extract_strided_slice %41 {offsets = [0, 0], sizes = [1, 8], strides = [1, 1]} : vector<32x8xf32> to vector<1x8xf32>
    %43 = vector.extract_strided_slice %41 {offsets = [0, 0], sizes = [31, 8], strides = [1, 1]} : vector<32x8xf32> to vector<31x8xf32>
    %44 = tpu.concatenate %42, %43 in 0 : vector<1x8xf32>, vector<31x8xf32> -> vector<32x8xf32>
    %cst_16 = arith.constant 0xFF800000 : f32
    %45 = vector.broadcast %cst_16 : f32 to vector<32x8xf32>
    %46 = arith.select %2, %45, %44 : vector<32x8xi1>, vector<32x8xf32>
    %47 = arith.maximumf %41, %46 : vector<32x8xf32>
    %48 = vector.extract_strided_slice %41 {offsets = [1, 0], sizes = [31, 8], strides = [1, 1]} : vector<32x8xf32> to vector<31x8xf32>
    %49 = vector.extract_strided_slice %41 {offsets = [31, 0], sizes = [1, 8], strides = [1, 1]} : vector<32x8xf32> to vector<1x8xf32>
    %50 = tpu.concatenate %48, %49 in 0 : vector<31x8xf32>, vector<1x8xf32> -> vector<32x8xf32>
    %cst_17 = arith.constant 0xFF800000 : f32
    %51 = vector.broadcast %cst_17 : f32 to vector<32x8xf32>
    %52 = arith.select %4, %51, %50 : vector<32x8xi1>, vector<32x8xf32>
    %53 = arith.maximumf %47, %52 : vector<32x8xf32>
    %c0_18 = arith.constant 0 : index
    %c0_19 = arith.constant 0 : index
    %54 = vector.load %arg9[%c0_18, %c0_19] : memref<32x8xf32, #tpu.memory_space<vmem>>, vector<32x8xf32>
    tpu.vector_store %arg9[%c0_18, %c0_19], %53 {strides = array<i32>} : memref<32x8xf32, #tpu.memory_space<vmem>>, vector<32x8xf32>,
    %c0_20 = arith.constant 0 : index
    %c0_21 = arith.constant 0 : index
    %55 = tpu.strided_load %arg9[%c0_20, %c0_21] {strides = array<i32: 2, 1>} : memref<32x8xf32, #tpu.memory_space<vmem>>, vector<16x8xf32>
    %c0_22 = arith.constant 0 : index
    %c0_23 = arith.constant 0 : index
    %56 = vector.load %arg6[%c0_22, %c0_23] : memref<8x16xf32, #tpu.memory_space<vmem>>, vector<8x16xf32>
    %cst_24 = arith.constant dense<0.000000e+00> : vector<16x16xf32>
    %57 = tpu.matmul %55, %56, %cst_24 {dimension_numbers = #tpu.dot_dimension_numbers<[1], [0], [0], [1], [0, 0, 1, 1], [], []>} : vector<16x8xf32>, vector<8x16xf32>, vector<16x16xf32> -> vector<16x16xf32>
    %c0_25 = arith.constant 0 : index
    %c0_26 = arith.constant 0 : index
    %58 = vector.load %arg7[%c0_25, %c0_26] : memref<1x16xf32, #tpu.memory_space<vmem>>, vector<1x16xf32>
    %59 = vector.broadcast %58 : vector<1x16xf32> to vector<16x16xf32>
    %60 = arith.addf %57, %59 : vector<16x16xf32>
    %c0_27 = arith.constant 0 : index
    %c0_28 = arith.constant 0 : index
    %61 = vector.load %arg8[%c0_27, %c0_28] : memref<16x16xf32, #tpu.memory_space<vmem>>, vector<16x16xf32>
    tpu.vector_store %arg8[%c0_27, %c0_28], %60 {strides = array<i32>} : memref<16x16xf32, #tpu.memory_space<vmem>>, vector<16x16xf32>,
    return
  }
  func.func @transform_0(%arg0: i32) -> (i32, i32) {
    %c0_i32 = arith.constant 0 : i32
    %c0_i32_0 = arith.constant 0 : i32
    return %arg0, %c0_i32 : i32, i32
  }
  func.func @transform_1(%arg0: i32) -> (i32, i32) {
    %c0_i32 = arith.constant 0 : i32
    %c0_i32_0 = arith.constant 0 : i32
    %c0_i32_1 = arith.constant 0 : i32
    return %c0_i32, %c0_i32_0 : i32, i32
  }
  func.func @transform_2(%arg0: i32) -> (i32, i32) {
    %c0_i32 = arith.constant 0 : i32
    %c0_i32_0 = arith.constant 0 : i32
    %c0_i32_1 = arith.constant 0 : i32
    return %c0_i32, %c0_i32_0 : i32, i32
  }
  func.func @transform_3(%arg0: i32) -> (i32, i32) {
    %c0_i32 = arith.constant 0 : i32
    %c0_i32_0 = arith.constant 0 : i32
    %c0_i32_1 = arith.constant 0 : i32
    return %c0_i32, %c0_i32_0 : i32, i32
  }
  func.func @transform_4(%arg0: i32) -> (i32, i32) {
    %c0_i32 = arith.constant 0 : i32
    %c0_i32_0 = arith.constant 0 : i32
    %c0_i32_1 = arith.constant 0 : i32
    return %c0_i32, %c0_i32_0 : i32, i32
  }
  func.func @transform_5(%arg0: i32) -> (i32, i32) {
    %c0_i32 = arith.constant 0 : i32
    %c0_i32_0 = arith.constant 0 : i32
    %c0_i32_1 = arith.constant 0 : i32
    return %c0_i32, %c0_i32_0 : i32, i32
  }
  func.func @transform_6(%arg0: i32) -> (i32, i32) {
    %c0_i32 = arith.constant 0 : i32
    %c0_i32_0 = arith.constant 0 : i32
    %c0_i32_1 = arith.constant 0 : i32
    return %c0_i32, %c0_i32_0 : i32, i32
  }
  func.func @transform_7(%arg0: i32) -> (i32, i32) {
    %c0_i32 = arith.constant 0 : i32
    %c0_i32_0 = arith.constant 0 : i32
    return %arg0, %c0_i32 : i32, i32
  }
}

</mosaic_0001>

<bundles_post_ra>
// kernel: tpu_custom_call.1
= control target key start
LH: loop header
LB: loop body
LE: loop exit
PB: predicated region body
PF: predicated region fallthrough
CT: control target
= control target key end

     0   :  { %s785_s24 = smov 0   ;;  %s938_s0 = inlined_call_operand.vmem [shape: f32[64,8], index: 0, kind: input, shape index: {}]   ;;  %s939_s1 = inlined_call_operand.vmem [shape: f32[24,8], index: 1, kind: input, shape index: {}]   ;;  %s940_s2 = inlined_call_operand.vmem [shape: f32[1,8], index: 2, kind: input, shape index: {}]   ;;  %s941_s3 = inlined_call_operand.vmem [shape: f32[24,8], index: 3, kind: input, shape index: {}]   ;;  %s942_s4 = inlined_call_operand.vmem [shape: f32[1,8], index: 4, kind: input, shape index: {}]   ;;  %s943_s5 = inlined_call_operand.vmem [shape: f32[8,16], index: 5, kind: input, shape index: {}]   ;;  %s944_s6 = inlined_call_operand.vmem [shape: f32[1,16], index: 6, kind: input, shape index: {}]   ;;  %s945_s7 = inlined_call_operand.vmem [shape: f32[32,16], index: 7, kind: output, shape index: {}]  }
   0x1 LB: > { %s695_s25 = sadd.s32 4294967295, %s741_s24   ;;  %p699_p0 = scmp.ge.s32.totalorder %s741_s24, 1  ;;  %s741_s24 = sphi %s785_s24, %s17_s24  }
   0x2   : > { %p238_p1 = scmp.lt.s32.totalorder %s741_s24, 3 }
   0x4   : > { %p239_p2 = pnand %p699_p0, %p238_p1 }
   0x5   : > { %s700_s26 = sshll.u32 (!%p239_p2), %s695_s25, 2  ;;  %s743_s8 = smov (!%p239_p2), 8  }
   0x6   : > { %242 = sbr.rel (%p239_p2) target bundleno = 699 (0x2bb), region = 48  ;;  %p271_p3 = scmp.lt.s32.totalorder (!%p239_p2), %s700_s26, 7 }
   0x7   : > { %s744_s9 = smov (!%p239_p2), 16  }
   0xb   : > { %v282_v0 = vlaneseq  ;;  %s947_s26 = smov (!%p271_p3, %s700_s26), 7  ;;  %vm320_vm0 = vcmask 1046528   ;;  %vm303_vm2 = vcmask 1040384   ;;  %v377_v19 = vld [vmem:[%s939_s1 + $0x10] sm:$0xff]  ;;  %v376_v20 = vld [vmem:[%s939_s1 + $0x8] sm:$0xff]  ;;  %v375_v21 = vld [vmem:[%s939_s1] sm:$0xff] }
   0xc   : > { %s701_s27 = sshll.u32 %s947_s26, 3  ;;  %716 = vmatpush.msra.mxu3 %v377_v19  ;;  %408 = vmatpush.msra.mxu0 %v377_v19  ;;  %vm365_vm3 = vcmask 64512   ;;  %vm370_vm4 = vcmask 130048   ;;  %vm382_vm5 = vcmask 195584   ;;  %v732_v44 = vld [vmem:[%s940_s2] ss:$0 sm:$0xff] }
   0xd   : > { %v795_v1 = vshrl.u32 %v282_v0, 7  ;;  %s274_s30 = scalar_lea.vmem %s938_s0, %s701_s27 }
   0xe   : > { %v296_v2 = vld [vmem:[%s274_s30 + $0x8] sm:$0xff]  ;;  %v800_v3 = vld [vmem:[%s274_s30 + $0x18] sm:$0xff]  ;;  %v802_v4 = vld [vmem:[%s274_s30 + $0x10] sm:$0xff]  ;;  %717 = vmatpush.msra.mxu3 %v376_v20  ;;  %409 = vmatpush.msra.mxu0 %v376_v20 }
   0xf   : > { %v805_v5 = vadd.s32 24, %v795_v1  ;;  %339 = vrot.lane.b32.xlu0 %v296_v2, %s743_s8  ;;  %341 = vrot.lane.b32.xlu1 %v802_v4, %s743_s8  ;;  %v322_v6 = vrot.slane %v296_v2, 1  ;;  %v324_v7 = vrot.slane %v802_v4, 1  ;;  %v326_v8 = vrot.slane %v800_v3, 1  ;;  %v295_v12 = vld [vmem:[%s274_s30] sm:$0xff]  ;;  %s702_s30 = sshll.u32 %s695_s25, 1 }
  0x10   : > { %343 = vrot.lane.b32.xlu2 %v800_v3, %s743_s8  ;;  %v321_v14 = vrot.slane %v295_v12, 1  ;;  %v307_v16 = vrot.slane %v802_v4, 7  ;;  %v305_v17 = vrot.slane %v296_v2, 7  ;;  %718 = vmatpush.msra.mxu3 %v375_v21  ;;  %v304_v24 = vrot.slane %v295_v12, 7  ;;  %p277_p4 = scmp.lt.s32.totalorder %s702_s30, 3 }
  0x11   : > { %vm294_vm1 = vcmp.eq.s32.totalorder %v805_v5, 31  ;;  %v332_v9 = vsel %vm320_vm0, %v326_v8, %v800_v3  ;;  %v325_v10 = vsel %vm320_vm0, %v322_v6, %v324_v7  ;;  %v327_v11 = vsel %vm320_vm0, %v324_v7, %v326_v8  ;;  %410 = vmatpush.msra.mxu0 %v375_v21  ;;  %v734_v5 = vld [vmem:[%s944_s6] ss:$0 sm:$0xff] }
  0x12   : > { %v336_v13 = vsel %vm294_vm1, 0.0, %v332_v9  ;;  %v323_v15 = vsel %vm320_vm0, %v321_v14, %v322_v6  ;;  %v308_v18 = vsel %vm303_vm2, %v305_v17, %v307_v16  ;;  %v306_v25 = vsel %vm303_vm2, %v304_v24, %v305_v17  ;;  %s949_s30 = smov (!%p277_p4, %s702_s30), 3 }
  0x13   : > { %vm287_vm6 = vcmp.eq.s32.totalorder %v795_v1, 0  ;;  %v315_v30 = vsel %vm303_vm2, %v295_v12, %v304_v24  ;;  %v309_v34 = vrot.slane %v800_v3, 7 }
  0x14   : > { %v316_v33 = vsel %vm287_vm6, 0.0, %v315_v30 }
  0x15   : > { %v310_v40 = vsel %vm303_vm2, %v307_v16, %v309_v34  ;;  %v733_v34 = vld [vmem:[%s942_s4] ss:$0 sm:$0xff] }
  0x17   : > { %355 = vrot.lane.b32.xlu0 %v325_v10, %s744_s9  ;;  %357 = vrot.lane.b32.xlu1 %v327_v11, %s744_s9  ;;  %v502_v11 = vld [vmem:[%s941_s3 + $0x10] sm:$0xff] }
  0x18   : > { %359 = vrot.lane.b32.xlu2 %v336_v13, %s744_s9  ;;  %719 = vmatpush.msra.mxu1 %v502_v11  ;;  %v500_v13 = vld [vmem:[%s941_s3] sm:$0xff] }
  0x19   : > { %532 = vmatpush.msrb.mxu0 %v502_v11 }
  0x1f   : > { %337 = vrot.lane.b32.xlu0 %v295_v12, %s743_s8  ;;  %353 = vrot.lane.b32.xlu1 %v323_v15, %s744_s9  ;;  %v501_v12 = vld [vmem:[%s941_s3 + $0x8] sm:$0xff] }
  0x20   : > { %720 = vmatpush.msra.mxu1 %v501_v12  ;;  %533 = vmatpush.msrb.mxu0 %v501_v12 }
  0x22   : > { %721 = vmatpush.msra.mxu1 %v500_v13  ;;  %534 = vmatpush.msrb.mxu0 %v500_v13 }
  0x6a   : > { %v344_v31 = vpop.permute.xlu2 %343 }
  0x6b   : > { %v369_v41 = vsel %vm365_vm3, %v310_v40, %v344_v31 }
  0x72   : > { %v360_v42 = vpop.permute.xlu2 %359 }
  0x73   : > { %v374_v43 = vsel %vm370_vm4, %v369_v41, %v360_v42 }
  0x81   : > { %v340_v22 = vpop.permute.xlu0 %339  ;;  %v342_v23 = vpop.permute.xlu1 %341 }
  0x82   : > { %v367_v26 = vsel %vm365_vm3, %v306_v25, %v340_v22  ;;  %v368_v32 = vsel %vm365_vm3, %v308_v18, %v342_v23 }
  0x89   : > { %v356_v27 = vpop.permute.xlu0 %355  ;;  %v358_v28 = vpop.permute.xlu1 %357 }
  0x8a   : > { %v372_v29 = vsel %vm370_vm4, %v367_v26, %v356_v27  ;;  %v373_v38 = vsel %vm370_vm4, %v368_v32, %v358_v28  ;;  %v603_v32 = vld [vmem:[%s943_s5] sm:$0xff] }
  0x8b   : > { %705 = vmatmul.msk.f32.vlgmr.msra.gmra.mxu3 %vm382_vm5, %v372_v29  ;;  %629 = vmatpush.msra.mxu2 %v603_v32 }
  0x91   : > { %v338_v35 = vpop.permute.xlu0 %337  ;;  %v354_v36 = vpop.permute.xlu1 %353 }
  0x92   : > { %v366_v37 = vsel %vm365_vm3, %v316_v33, %v338_v35 }
  0x93   : > { %706 = vmatmul.msk.f32.gmra.mxu3 %vm382_vm5, %v373_v38  ;;  %v371_v39 = vsel %vm370_vm4, %v366_v37, %v354_v36 }
  0x94   : > { %704 = vmatmul.msk.f32.vlgmr.msra.gmra.mxu0 %vm382_vm5, %v371_v39 }
  0x9b   : > { %707 = vmatmul.msk.f32.gmra.mxu3 %vm382_vm5, %v374_v43 }
 0x10e   : > { %v415_v45 = vpop.f32.mrf.mxu3 }
 0x10f   : > { %v416_v46 = vadd.f32 %v732_v44, %v415_v45 }
 0x111   : > { %v425_v47 = vmax.f32 %v416_v46, 0.0  ;;  %v412_v48 = vpop.f32.mrf.mxu0 }
 0x112   : > { %v413_v49 = vadd.f32 %v732_v44, %v412_v48 }
 0x113   : > { %466 = vrot.lane.b32.xlu2 %v425_v47, %s743_s8  ;;  %v433_v51 = vrot.slane %v425_v47, 7  ;;  %v449_v57 = vrot.slane %v425_v47, 1 }
 0x114   : > { %v424_v50 = vmax.f32 %v413_v49, 0.0 }
 0x116   : > { %464 = vrot.lane.b32.xlu1 %v424_v50, %s743_s8  ;;  %v418_v52 = vpop.f32.mrf.mxu3  ;;  %v432_v53 = vrot.slane %v424_v50, 7  ;;  %v448_v2 = vrot.slane %v424_v50, 1 }
 0x117   : > { %v419_v54 = vadd.f32 %v732_v44, %v418_v52 }
 0x118   : > { %v434_v55 = vsel %vm303_vm2, %v432_v53, %v433_v51  ;;  %v450_v7 = vsel %vm320_vm0, %v448_v2, %v449_v57  ;;  %v443_v20 = vsel %vm303_vm2, %v424_v50, %v432_v53 }
 0x119   : > { %v426_v56 = vmax.f32 %v419_v54, 0.0  ;;  %v444_v21 = vsel %vm287_vm6, 0.0, %v443_v20 }
 0x11b   : > { %v435_v58 = vrot.slane %v426_v56, 7  ;;  %v451_v59 = vrot.slane %v426_v56, 1  ;;  %468 = vrot.lane.b32.xlu2 %v426_v56, %s743_s8 }
 0x11d   : > { %v452_v60 = vsel %vm320_vm0, %v449_v57, %v451_v59  ;;  %v436_v61 = vsel %vm303_vm2, %v433_v51, %v435_v58 }
 0x11e   : > { %v421_v62 = vpop.f32.mrf.mxu3  ;;  %482 = vrot.lane.b32.xlu0 %v452_v60, %s744_s9 }
 0x11f   : > { %v422_v63 = vadd.f32 %v732_v44, %v421_v62 }
 0x121   : > { %v427_v0 = vmax.f32 %v422_v63, 0.0 }
 0x123   : > { %470 = vrot.lane.b32.xlu2 %v427_v0, %s743_s8  ;;  %v453_v3 = vrot.slane %v427_v0, 1  ;;  %v437_v4 = vrot.slane %v427_v0, 7  ;;  %s703_s8 = sshll.u32 %s949_s30, 3 }
 0x124   : > { %s280_s13 = scalar_lea.vmem %s945_s7, %s703_s8 }
 0x125   : > { %v454_v6 = vsel %vm320_vm0, %v451_v59, %v453_v3  ;;  %v438_v8 = vsel %vm303_vm2, %v435_v58, %v437_v4  ;;  %v459_v9 = vsel %vm320_vm0, %v453_v3, %v427_v0 }
 0x126   : > { %484 = vrot.lane.b32.xlu1 %v454_v6, %s744_s9  ;;  %480 = vrot.lane.b32.xlu0 %v450_v7, %s744_s9  ;;  %v463_v10 = vsel %vm294_vm1, 0.0, %v459_v9 }
 0x12e   : > { %486 = vrot.lane.b32.xlu0 %v463_v10, %s744_s9 }
 0x16d   : > { %v467_v14 = vpop.permute.xlu2 %466 }
 0x16e   : > { %v493_v15 = vsel %vm365_vm3, %v434_v55, %v467_v14 }
 0x175   : > { %v469_v19 = vpop.permute.xlu2 %468 }
 0x176   : > { %v494_v22 = vsel %vm365_vm3, %v436_v61, %v469_v19 }
 0x17d   : > { %v471_v28 = vpop.permute.xlu2 %470 }
 0x17e   : > { %v495_v29 = vsel %vm365_vm3, %v438_v8, %v471_v28 }
 0x188   : > { %v465_v16 = vpop.permute.xlu1 %464 }
 0x189   : > { %v492_v23 = vsel %vm365_vm3, %v444_v21, %v465_v16 }
 0x190   : > { %v483_v17 = vpop.permute.xlu0 %482 }
 0x191   : > { %v497_v18 = vsel %vm370_vm4, %v493_v15, %v483_v17 }
 0x192   : > { %709 = vmatmul.msk.f32.vlgmr.msra.gmra.mxu1 %vm382_vm5, %v497_v18 }
 0x198   : > { %v485_v24 = vpop.permute.xlu1 %484  ;;  %v481_v25 = vpop.permute.xlu0 %480 }
 0x199   : > { %v496_v26 = vsel %vm370_vm4, %v492_v23, %v481_v25  ;;  %v498_v27 = vsel %vm370_vm4, %v494_v22, %v485_v24 }
 0x19a   : > { %708 = vmatmul.msk.f32.vlgmr.msrb.gmra.mxu0 %vm382_vm5, %v496_v26  ;;  %710 = vmatmul.msk.f32.gmra.mxu1 %vm382_vm5, %v498_v27 }
 0x1a0   : > { %v487_v30 = vpop.permute.xlu0 %486 }
 0x1a1   : > { %v499_v31 = vsel %vm370_vm4, %v495_v29, %v487_v30 }
 0x1a2   : > { %711 = vmatmul.msk.f32.gmra.mxu1 %vm382_vm5, %v499_v31 }
 0x20f   : > { %v539_v33 = vpop.f32.mrf.mxu1 }
 0x210   : > { %v540_v35 = vadd.f32 %v733_v34, %v539_v33 }
 0x212   : > { %v549_v38 = vmax.f32 %v540_v35, 0.0 }
 0x214   : > { %v557_v43 = vrot.slane %v549_v38, 7  ;;  %v577_v47 = vrot.slane %v549_v38, 1 }
 0x217   : > { %v536_v36 = vpop.f32.mrf.mxu0  ;;  %v542_v37 = vpop.f32.mrf.mxu1 }
 0x218   : > { %v537_v39 = vadd.f32 %v733_v34, %v536_v36  ;;  %v543_v40 = vadd.f32 %v733_v34, %v542_v37 }
 0x21a   : > { %v548_v41 = vmax.f32 %v537_v39, 0.0  ;;  %v550_v42 = vmax.f32 %v543_v40, 0.0 }
 0x21c   : > { %v556_v44 = vrot.slane %v548_v41, 7  ;;  %v579_v45 = vrot.slane %v550_v42, 1  ;;  %v576_v46 = vrot.slane %v548_v41, 1  ;;  %v559_v50 = vrot.slane %v550_v42, 7 }
 0x21e   : > { %v558_v48 = vsel %vm303_vm2, %v556_v44, %v557_v43  ;;  %v567_v49 = vsel %vm303_vm2, %v548_v41, %v556_v44  ;;  %v580_v55 = vsel %vm320_vm0, %v577_v47, %v579_v45  ;;  %v578_v57 = vsel %vm320_vm0, %v576_v46, %v577_v47 }
 0x21f   : > { %v568_v51 = vsel %vm287_vm6, -inf, %v567_v49  ;;  %v573_v52 = vmax.f32 %v549_v38, %v558_v48  ;;  %v545_v53 = vpop.f32.mrf.mxu1  ;;  %v560_v60 = vsel %vm303_vm2, %v557_v43, %v559_v50 }
 0x220   : > { %v572_v54 = vmax.f32 %v548_v41, %v568_v51  ;;  %v546_v56 = vadd.f32 %v733_v34, %v545_v53  ;;  %v574_v63 = vmax.f32 %v550_v42, %v560_v60 }
 0x221   : > { %v593_v58 = vmax.f32 %v573_v52, %v580_v55 }
 0x222   : > { %v592_v59 = vmax.f32 %v572_v54, %v578_v57  ;;  %v551_v61 = vmax.f32 %v546_v56, 0.0 }
 0x223   : > { %597 = vst.msk [vmem:[#allocation2 + $0x8] sm:$0xff] %vm365_vm3, %v593_v58 }
 0x224   : > { %596 = vst.msk [vmem:[#allocation2] sm:$0xff] %vm365_vm3, %v592_v59  ;;  %v561_v62 = vrot.slane %v551_v61, 7  ;;  %v581_v1 = vrot.slane %v551_v61, 1 }
 0x226   : > { %v562_v0 = vsel %vm303_vm2, %v559_v50, %v561_v62  ;;  %v582_v2 = vsel %vm320_vm0, %v579_v45, %v581_v1  ;;  %v587_v3 = vsel %vm320_vm0, %v581_v1, %v551_v61 }
 0x227   : > { %v575_v4 = vmax.f32 %v551_v61, %v562_v0  ;;  %v591_v6 = vsel %vm294_vm1, -inf, %v587_v3  ;;  %v594_v7 = vmax.f32 %v574_v63, %v582_v2 }
 0x229   : > { %v595_v8 = vmax.f32 %v575_v4, %v591_v6  ;;  %598 = vst.msk [vmem:[#allocation2 + $0x10] sm:$0xff] %vm365_vm3, %v594_v7 }
 0x22b   : > { %599 = vst.msk [vmem:[#allocation2 + $0x18] sm:$0xff] %vm365_vm3, %v595_v8  ;;  %v600_v9 = vld [vmem:[#allocation2] ss:$2 sm:$0xff] }
 0x22c   : > { %712 = vmatmul.msk.f32.vlgmr.msra.gmra.mxu2 %vm365_vm3, %v600_v9 }
 0x232   : > { %v602_v10 = vld [vmem:[#allocation2 + $0x10] ss:$2 sm:$0xff] }
 0x234   : > { %713 = vmatmul.msk.f32.gmra.mxu2 %vm365_vm3, %v602_v10 }
 0x2af   : > { %v631_v11 = vpop.f32.mrf.mxu2 }
 0x2b0   : > { %v632_v12 = vadd.f32 %v734_v5, %v631_v11 }
 0x2b2   : > { %637 = vst.msk [vmem:[%s280_s13] sm:$0xff] %vm370_vm4, %v632_v12 }
 0x2b7   : > { %v634_v13 = vpop.f32.mrf.mxu2 }
 0x2b8   : > { %v635_v14 = vadd.f32 %v734_v5, %v634_v13 }
 0x2ba   : > { %638 = vst.msk [vmem:[%s280_s13 + $0x8] sm:$0xff] %vm370_vm4, %v635_v14 }
 0x2bb PF: > { %s17_s24 = sadd.s32 1, %s741_s24  }
 0x2bc   : > { %p14_p5 = scmp.ge.s32.totalorder %s17_s24, 4  }
 0x2be   :  { %16 = sbr.rel (!%p14_p5) target bundleno = 1 (0x1), region = 79 }

</bundles_post_ra>
